<compile_context>
chip_gen: v5e
topology: v5e:2x2
jax: 0.10.0
libtpu: 0.0.40
codegen_flags: <defaults>
</compile_context>

<pallas_src>
import functools

import jax
import jax.numpy as jnp
from jax import lax
from jax.experimental import pallas as pl
from jax.experimental.pallas import tpu as pltpu


def _ema_kernel(w_ref, omw_ref, x_ref, o_ref, carry_ref):
    """One grid step = TT time steps of the EMA recurrence for one lane block.

    w_ref:     (1, LN)   clamped smoothing coefficient (lane-aligned, resident)
    omw_ref:   (1, LN)   1 - clamped coefficient (resident)
    x_ref:     (TT, LN)  current time-block of the input
    o_ref:     (TT, LN)  current time-block of the output
    carry_ref: (1, LN)   VMEM scratch holding y[t-1] across time blocks
    """
    # First time-block of this lane block: seed carry with x[0] so that the
    # uniform recurrence reproduces y[0] = x[0].
    @pl.when(pl.program_id(1) == 0)
    def _():
        carry_ref[...] = x_ref[0:1, :]

    w = w_ref[...]        # (1, LN)
    omw = omw_ref[...]    # (1, LN)
    tt = x_ref.shape[0]

    def body(i, carry):
        x_t = x_ref[pl.ds(i, 1), :]          # (1, LN)
        y = w * x_t + omw * carry            # (1, LN)
        o_ref[pl.ds(i, 1), :] = y
        return y

    # Carry stays in a register through the unrolled inner loop; one VMEM
    # read before and one write after the block.
    carry_ref[...] = lax.fori_loop(0, tt, body, carry_ref[...], unroll=True)


def _round_up(a, b):
    return ((a + b - 1) // b) * b


@functools.partial(jax.jit, static_argnames=("time_block", "lane_block"))
def ema_forward(x, weights, initial_state=None, *, time_block=128, lane_block=512):
    """Exponential moving average.

    Args:
      x:        (B, C, T) float32 — same layout the PyTorch module consumes.
      weights:  (C,) or (1,) float32 smoothing coefficients (pre-clamp).
      initial_state: unused (mirrors the PyTorch forward, which ignores it).
      time_block: max time steps processed per grid iteration.
      lane_block: max lane width per grid iteration (multiple of 128).

    Returns:
      (B, T, C) float32, matching the PyTorch module's output.
    """
    del initial_state  # unused by the reference forward
    B, C, T = x.shape
    BC = B * C
    x = x.astype(jnp.float32)

    # Hoist clamp and (1 - w) out of the kernel; lay coefficients out to match
    # the flattened (b*C + c) lane order.
    w_c = jnp.clip(jnp.broadcast_to(weights.astype(jnp.float32), (C,)), 0.0, 0.2)
    w_flat = jnp.tile(w_c, (B,))             # (B*C,)
    omw_flat = 1.0 - w_flat

    # Lane padding: flatten (B, C) onto lanes, pad to a multiple of 128 and of
    # the lane block so stores are dense, unmasked vst's.
    n128 = _round_up(BC, 128)
    ln = min(lane_block, n128)
    ln = _round_up(ln, 128)
    n_pad = _round_up(n128, ln)

    # Time padding: TT time steps per grid iteration (sublane-aligned).
    tt = min(time_block, _round_up(T, 8))
    t_pad = _round_up(T, tt)

    x_tn = jnp.transpose(x, (2, 0, 1)).reshape(T, BC)           # (T, B*C)
    x_pad = jnp.zeros((t_pad, n_pad), jnp.float32).at[:T, :BC].set(x_tn)
    w_pad = jnp.zeros((1, n_pad), jnp.float32).at[0, :BC].set(w_flat)
    omw_pad = jnp.zeros((1, n_pad), jnp.float32).at[0, :BC].set(omw_flat)

    grid = (n_pad // ln, t_pad // tt)   # (parallel lane blocks, sequential time)

    out_pad = pl.pallas_call(
        _ema_kernel,
        out_shape=jax.ShapeDtypeStruct((t_pad, n_pad), jnp.float32),
        grid_spec=pltpu.PrefetchScalarGridSpec(
            num_scalar_prefetch=0,
            grid=grid,
            in_specs=[
                pl.BlockSpec((1, ln), lambda c, t: (0, c)),     # w (resident)
                pl.BlockSpec((1, ln), lambda c, t: (0, c)),     # 1 - w (resident)
                pl.BlockSpec((tt, ln), lambda c, t: (t, c)),    # x time-block
            ],
            out_specs=pl.BlockSpec((tt, ln), lambda c, t: (t, c)),
            scratch_shapes=[pltpu.VMEM((1, ln), jnp.float32)],  # carry y[t-1]
        ),
        compiler_params=pltpu.CompilerParams(
            # lane blocks are independent (megacore on v7x); time is a
            # sequential recurrence.
            dimension_semantics=("parallel", "arbitrary"),
        ),
    )(w_pad, omw_pad, x_pad)

    # TODO(synk): if C >= 128 the output could be written directly in (B, T, C)
    # from the kernel to skip this final relayout; with small C the lane-dense
    # (T, B*C) compute layout wins, so we relayout once here.
    out = out_pad[:T, :BC].reshape(T, B, C)
    return jnp.transpose(out, (1, 0, 2))                        # (B, T, C)


def _ema_reference(x, weights):
    """Pure-JAX reference (mirrors the PyTorch scan) for verification."""
    B, C, T = x.shape
    w = jnp.clip(jnp.broadcast_to(weights, (C,)), 0.0, 0.2)     # (C,)
    x_t = jnp.transpose(x, (2, 0, 1))                           # (T, B, C)

    def step(a, y):
        out = w * y + (1.0 - w) * a
        return out, out

    _, rest = jax.lax.scan(step, x_t[0], x_t[1:])
    res = jnp.concatenate([x_t[:1], rest], axis=0)              # (T, B, C)
    return jnp.transpose(res, (1, 0, 2))                        # (B, T, C)


if __name__ == "__main__":
    # ExponentialMovingAverage(coeff_init=0.04, per_channel=True), build(C)
    coeff_init = 0.04
    B, C, T = 2, 16, 8
    weights = jnp.full((C,), coeff_init, dtype=jnp.float32)     # deterministic init

    key = jax.random.PRNGKey(0)
    x = jax.random.normal(key, (B, C, T), dtype=jnp.float32)
    initial_state = x[:, :, 0]                                  # accepted, unused

    out = ema_forward(x, weights, initial_state)
    out = jax.block_until_ready(out)

    ref = _ema_reference(x, weights)
    assert out.shape == (B, T, C)
    assert jnp.allclose(out, ref, atol=1e-5, rtol=1e-5)
    print("KERNEL_OK")
</pallas_src>

<mosaic_0001>
module attributes {stable_mosaic.version = 11 : i64} {
  func.func @_ema_kernel(%arg0: i32, %arg1: i32, %arg2: memref<1x128xf32, #tpu.memory_space<vmem>>, %arg3: memref<1x128xf32, #tpu.memory_space<vmem>>, %arg4: memref<8x128xf32, #tpu.memory_space<vmem>>, %arg5: memref<8x128xf32, #tpu.memory_space<vmem>>, %arg6: memref<1x128xf32, #tpu.memory_space<vmem>>) attributes {dimension_semantics = [#tpu.dimension_semantics<parallel>, #tpu.dimension_semantics<arbitrary>], iteration_bounds = array<i64: 1, 1>, scalar_prefetch = 0 : i64, scratch_operands = 1 : i64, tpu.core_type = #tpu.core_type<tc>, window_params = [{transform_indices = @transform_0, window_bounds = array<i64: 1, 128>}, {transform_indices = @transform_1, window_bounds = array<i64: 1, 128>}, {transform_indices = @transform_2, window_bounds = array<i64: 8, 128>}, {transform_indices = @transform_3, window_bounds = array<i64: 8, 128>}]} {
    %c0_i32 = arith.constant 0 : i32
    %0 = arith.cmpi eq, %arg1, %c0_i32 : i32
    %1 = arith.extui %0 : i1 to i32
    %c0_i32_0 = arith.constant 0 : i32
    %2 = arith.cmpi ne, %1, %c0_i32_0 : i32
    scf.if %2 {
      %c0_25 = arith.constant 0 : index
      %c0_26 = arith.constant 0 : index
      %63 = vector.load %arg4[%c0_25, %c0_26] : memref<8x128xf32, #tpu.memory_space<vmem>>, vector<1x128xf32>
      %c0_27 = arith.constant 0 : index
      %c0_28 = arith.constant 0 : index
      %64 = vector.load %arg6[%c0_27, %c0_28] : memref<1x128xf32, #tpu.memory_space<vmem>>, vector<1x128xf32>
      tpu.vector_store %arg6[%c0_27, %c0_28], %63 {strides = array<i32>} : memref<1x128xf32, #tpu.memory_space<vmem>>, vector<1x128xf32>,
    } else {
    }
    %c0 = arith.constant 0 : index
    %c0_1 = arith.constant 0 : index
    %3 = vector.load %arg2[%c0, %c0_1] : memref<1x128xf32, #tpu.memory_space<vmem>>, vector<1x128xf32>
    %c0_2 = arith.constant 0 : index
    %c0_3 = arith.constant 0 : index
    %4 = vector.load %arg3[%c0_2, %c0_3] : memref<1x128xf32, #tpu.memory_space<vmem>>, vector<1x128xf32>
    %c0_4 = arith.constant 0 : index
    %c0_5 = arith.constant 0 : index
    %5 = vector.load %arg6[%c0_4, %c0_5] : memref<1x128xf32, #tpu.memory_space<vmem>>, vector<1x128xf32>
    %c0_i32_6 = arith.constant 0 : i32
    %6 = arith.index_cast %c0_i32_6 : i32 to index
    %c0_7 = arith.constant 0 : index
    %7 = vector.load %arg4[%6, %c0_7] : memref<8x128xf32, #tpu.memory_space<vmem>>, vector<1x128xf32>
    %8 = arith.mulf %3, %7 : vector<1x128xf32>
    %9 = arith.mulf %4, %5 : vector<1x128xf32>
    %10 = arith.addf %8, %9 : vector<1x128xf32>
    %11 = arith.index_cast %c0_i32_6 : i32 to index
    %c0_8 = arith.constant 0 : index
    %12 = vector.load %arg5[%11, %c0_8] : memref<8x128xf32, #tpu.memory_space<vmem>>, vector<1x128xf32>
    tpu.vector_store %arg5[%11, %c0_8], %10 {strides = array<i32>} : memref<8x128xf32, #tpu.memory_space<vmem>>, vector<1x128xf32>,
    %c1_i32 = arith.constant 1 : i32
    %13 = arith.index_cast %c1_i32 : i32 to index
    %c0_9 = arith.constant 0 : index
    %14 = vector.load %arg4[%13, %c0_9] : memref<8x128xf32, #tpu.memory_space<vmem>>, vector<1x128xf32>
    %15 = arith.mulf %3, %14 : vector<1x128xf32>
    %16 = arith.mulf %4, %10 : vector<1x128xf32>
    %17 = arith.addf %15, %16 : vector<1x128xf32>
    %18 = arith.index_cast %c1_i32 : i32 to index
    %c0_10 = arith.constant 0 : index
    %19 = vector.load %arg5[%18, %c0_10] : memref<8x128xf32, #tpu.memory_space<vmem>>, vector<1x128xf32>
    tpu.vector_store %arg5[%18, %c0_10], %17 {strides = array<i32>} : memref<8x128xf32, #tpu.memory_space<vmem>>, vector<1x128xf32>,
    %c2_i32 = arith.constant 2 : i32
    %20 = arith.index_cast %c2_i32 : i32 to index
    %c0_11 = arith.constant 0 : index
    %21 = vector.load %arg4[%20, %c0_11] : memref<8x128xf32, #tpu.memory_space<vmem>>, vector<1x128xf32>
    %22 = arith.mulf %3, %21 : vector<1x128xf32>
    %23 = arith.mulf %4, %17 : vector<1x128xf32>
    %24 = arith.addf %22, %23 : vector<1x128xf32>
    %25 = arith.index_cast %c2_i32 : i32 to index
    %c0_12 = arith.constant 0 : index
    %26 = vector.load %arg5[%25, %c0_12] : memref<8x128xf32, #tpu.memory_space<vmem>>, vector<1x128xf32>
    tpu.vector_store %arg5[%25, %c0_12], %24 {strides = array<i32>} : memref<8x128xf32, #tpu.memory_space<vmem>>, vector<1x128xf32>,
    %c3_i32 = arith.constant 3 : i32
    %27 = arith.index_cast %c3_i32 : i32 to index
    %c0_13 = arith.constant 0 : index
    %28 = vector.load %arg4[%27, %c0_13] : memref<8x128xf32, #tpu.memory_space<vmem>>, vector<1x128xf32>
    %29 = arith.mulf %3, %28 : vector<1x128xf32>
    %30 = arith.mulf %4, %24 : vector<1x128xf32>
    %31 = arith.addf %29, %30 : vector<1x128xf32>
    %32 = arith.index_cast %c3_i32 : i32 to index
    %c0_14 = arith.constant 0 : index
    %33 = vector.load %arg5[%32, %c0_14] : memref<8x128xf32, #tpu.memory_space<vmem>>, vector<1x128xf32>
    tpu.vector_store %arg5[%32, %c0_14], %31 {strides = array<i32>} : memref<8x128xf32, #tpu.memory_space<vmem>>, vector<1x128xf32>,
    %c4_i32 = arith.constant 4 : i32
    %34 = arith.index_cast %c4_i32 : i32 to index
    %c0_15 = arith.constant 0 : index
    %35 = vector.load %arg4[%34, %c0_15] : memref<8x128xf32, #tpu.memory_space<vmem>>, vector<1x128xf32>
    %36 = arith.mulf %3, %35 : vector<1x128xf32>
    %37 = arith.mulf %4, %31 : vector<1x128xf32>
    %38 = arith.addf %36, %37 : vector<1x128xf32>
    %39 = arith.index_cast %c4_i32 : i32 to index
    %c0_16 = arith.constant 0 : index
    %40 = vector.load %arg5[%39, %c0_16] : memref<8x128xf32, #tpu.memory_space<vmem>>, vector<1x128xf32>
    tpu.vector_store %arg5[%39, %c0_16], %38 {strides = array<i32>} : memref<8x128xf32, #tpu.memory_space<vmem>>, vector<1x128xf32>,
    %c5_i32 = arith.constant 5 : i32
    %41 = arith.index_cast %c5_i32 : i32 to index
    %c0_17 = arith.constant 0 : index
    %42 = vector.load %arg4[%41, %c0_17] : memref<8x128xf32, #tpu.memory_space<vmem>>, vector<1x128xf32>
    %43 = arith.mulf %3, %42 : vector<1x128xf32>
    %44 = arith.mulf %4, %38 : vector<1x128xf32>
    %45 = arith.addf %43, %44 : vector<1x128xf32>
    %46 = arith.index_cast %c5_i32 : i32 to index
    %c0_18 = arith.constant 0 : index
    %47 = vector.load %arg5[%46, %c0_18] : memref<8x128xf32, #tpu.memory_space<vmem>>, vector<1x128xf32>
    tpu.vector_store %arg5[%46, %c0_18], %45 {strides = array<i32>} : memref<8x128xf32, #tpu.memory_space<vmem>>, vector<1x128xf32>,
    %c6_i32 = arith.constant 6 : i32
    %48 = arith.index_cast %c6_i32 : i32 to index
    %c0_19 = arith.constant 0 : index
    %49 = vector.load %arg4[%48, %c0_19] : memref<8x128xf32, #tpu.memory_space<vmem>>, vector<1x128xf32>
    %50 = arith.mulf %3, %49 : vector<1x128xf32>
    %51 = arith.mulf %4, %45 : vector<1x128xf32>
    %52 = arith.addf %50, %51 : vector<1x128xf32>
    %53 = arith.index_cast %c6_i32 : i32 to index
    %c0_20 = arith.constant 0 : index
    %54 = vector.load %arg5[%53, %c0_20] : memref<8x128xf32, #tpu.memory_space<vmem>>, vector<1x128xf32>
    tpu.vector_store %arg5[%53, %c0_20], %52 {strides = array<i32>} : memref<8x128xf32, #tpu.memory_space<vmem>>, vector<1x128xf32>,
    %c7_i32 = arith.constant 7 : i32
    %55 = arith.index_cast %c7_i32 : i32 to index
    %c0_21 = arith.constant 0 : index
    %56 = vector.load %arg4[%55, %c0_21] : memref<8x128xf32, #tpu.memory_space<vmem>>, vector<1x128xf32>
    %57 = arith.mulf %3, %56 : vector<1x128xf32>
    %58 = arith.mulf %4, %52 : vector<1x128xf32>
    %59 = arith.addf %57, %58 : vector<1x128xf32>
    %60 = arith.index_cast %c7_i32 : i32 to index
    %c0_22 = arith.constant 0 : index
    %61 = vector.load %arg5[%60, %c0_22] : memref<8x128xf32, #tpu.memory_space<vmem>>, vector<1x128xf32>
    tpu.vector_store %arg5[%60, %c0_22], %59 {strides = array<i32>} : memref<8x128xf32, #tpu.memory_space<vmem>>, vector<1x128xf32>,
    %c8_i32 = arith.constant 8 : i32
    %c0_23 = arith.constant 0 : index
    %c0_24 = arith.constant 0 : index
    %62 = vector.load %arg6[%c0_23, %c0_24] : memref<1x128xf32, #tpu.memory_space<vmem>>, vector<1x128xf32>
    tpu.vector_store %arg6[%c0_23, %c0_24], %59 {strides = array<i32>} : memref<1x128xf32, #tpu.memory_space<vmem>>, vector<1x128xf32>,
    return
  }
  func.func @transform_0(%arg0: i32, %arg1: i32) -> (i32, i32) {
    %c0_i32 = arith.constant 0 : i32
    %c0_i32_0 = arith.constant 0 : i32
    return %c0_i32, %arg0 : i32, i32
  }
  func.func @transform_1(%arg0: i32, %arg1: i32) -> (i32, i32) {
    %c0_i32 = arith.constant 0 : i32
    %c0_i32_0 = arith.constant 0 : i32
    return %c0_i32, %arg0 : i32, i32
  }
  func.func @transform_2(%arg0: i32, %arg1: i32) -> (i32, i32) {
    %c0_i32 = arith.constant 0 : i32
    return %arg1, %arg0 : i32, i32
  }
  func.func @transform_3(%arg0: i32, %arg1: i32) -> (i32, i32) {
    %c0_i32 = arith.constant 0 : i32
    return %arg1, %arg0 : i32, i32
  }
}

</mosaic_0001>

<bundles_post_ra>
// kernel: ema_forward.1
= control target key start
LH: loop header
LB: loop body
LE: loop exit
PB: predicated region body
PF: predicated region fallthrough
CT: control target
= control target key end

     0   :  { %s145_s2 = inlined_call_operand.vmem [shape: f32[8,128], index: 2, kind: input, shape index: {}]   ;;  %s146_s0 = inlined_call_operand.vmem [shape: f32[1,128], index: 0, kind: input, shape index: {}]   ;;  %s147_s1 = inlined_call_operand.vmem [shape: f32[1,128], index: 1, kind: input, shape index: {}]   ;;  %s148_s3 = inlined_call_operand.vmem [shape: f32[8,128], index: 3, kind: output, shape index: {}]  }
   0x1   :  { %v18_v0 = vld [vmem:[%s145_s2] sm:$0x1]  ;;  %v28_v6 = vld [vmem:[%s145_s2 + $0x1] sm:$0x1]  ;;  %v33_v10 = vld [vmem:[%s145_s2 + $0x2] sm:$0x1] }
   0x2   :  { %19 = vst [vmem:[#allocation2] sm:$0x1] %v18_v0  ;;  %v20_v1 = vld [vmem:[%s146_s0] sm:$0x1]  ;;  %v38_v14 = vld [vmem:[%s145_s2 + $0x3] sm:$0x1] }
   0x3   :  { %v23_v2 = vld [vmem:[%s145_s2] sm:$0x1]  ;;  %v29_v9 = vmul.f32 %v28_v6, %v20_v1  ;;  %v34_v13 = vmul.f32 %v33_v10, %v20_v1  ;;  %v39_v17 = vmul.f32 %v38_v14, %v20_v1  ;;  %v43_v18 = vld [vmem:[%s145_s2 + $0x4] sm:$0x1]  ;;  %v48_v22 = vld [vmem:[%s145_s2 + $0x5] sm:$0x1] }
   0x4   :  { %v21_v3 = vld [vmem:[%s147_s1] sm:$0x1]  ;;  %v24_v4 = vmul.f32 %v23_v2, %v20_v1  ;;  %v44_v21 = vmul.f32 %v43_v18, %v20_v1  ;;  %v49_v25 = vmul.f32 %v48_v22, %v20_v1  ;;  %v53_v26 = vld [vmem:[%s145_s2 + $0x6] sm:$0x1]  ;;  %v58_v30 = vld [vmem:[%s145_s2 + $0x7] sm:$0x1] }
   0x5   :  { %v54_v29 = vmul.f32 %v53_v26, %v20_v1  ;;  %v59_v33 = vmul.f32 %v58_v30, %v20_v1 }
   0x9   :  { %v22_v5 = vld [vmem:[#allocation2] sm:$0x1] }
   0xa   :  { %v25_v7 = vmul.f32 %v22_v5, %v21_v3 }
   0xc   :  { %v26_v8 = vadd.f32 %v25_v7, %v24_v4 }
   0xe   :  { %27 = vst [vmem:[%s148_s3] sm:$0x1] %v26_v8  ;;  %v30_v11 = vmul.f32 %v26_v8, %v21_v3 }
  0x10   :  { %v31_v12 = vadd.f32 %v30_v11, %v29_v9 }
  0x12   :  { %32 = vst [vmem:[%s148_s3 + $0x1] sm:$0x1] %v31_v12  ;;  %v35_v15 = vmul.f32 %v31_v12, %v21_v3 }
  0x14   :  { %v36_v16 = vadd.f32 %v35_v15, %v34_v13 }
  0x16   :  { %37 = vst [vmem:[%s148_s3 + $0x2] sm:$0x1] %v36_v16  ;;  %v40_v19 = vmul.f32 %v36_v16, %v21_v3 }
  0x18   :  { %v41_v20 = vadd.f32 %v40_v19, %v39_v17 }
  0x1a   :  { %42 = vst [vmem:[%s148_s3 + $0x3] sm:$0x1] %v41_v20  ;;  %v45_v23 = vmul.f32 %v41_v20, %v21_v3 }
  0x1c   :  { %v46_v24 = vadd.f32 %v45_v23, %v44_v21 }
  0x1e   :  { %47 = vst [vmem:[%s148_s3 + $0x4] sm:$0x1] %v46_v24  ;;  %v50_v27 = vmul.f32 %v46_v24, %v21_v3 }
  0x20   :  { %v51_v28 = vadd.f32 %v50_v27, %v49_v25 }
  0x22   :  { %52 = vst [vmem:[%s148_s3 + $0x5] sm:$0x1] %v51_v28  ;;  %v55_v31 = vmul.f32 %v51_v28, %v21_v3 }
  0x24   :  { %v56_v32 = vadd.f32 %v55_v31, %v54_v29 }
  0x26   :  { %57 = vst [vmem:[%s148_s3 + $0x6] sm:$0x1] %v56_v32  ;;  %v60_v34 = vmul.f32 %v56_v32, %v21_v3 }
  0x28   :  { %v61_v35 = vadd.f32 %v60_v34, %v59_v33 }
  0x2a   :  { %62 = vst [vmem:[%s148_s3 + $0x7] sm:$0x1] %v61_v35 }
  0x2b   :  { %63 = vst [vmem:[#allocation2] sm:$0x1] %v61_v35 }

</bundles_post_ra>
